<compile_context>
chip_gen: v5e
topology: v5e:2x2
jax: 0.10.0
libtpu: 0.0.40
codegen_flags: <defaults>
</compile_context>

<pallas_src>
import jax
import jax.numpy as jnp
from jax.experimental import pallas as pl
from jax.experimental.pallas import tpu as pltpu


def _awl_kernel(p_ref, l_ref, out_ref):
    # p_ref, l_ref: (1, NUM) f32 VMEM tiles (params and per-task losses).
    # out_ref:      (1, 1)  f32 SMEM tile (scalar loss sum).
    p = p_ref[...]                                   # (1, NUM) params
    p2 = p * p                                       # params[i]^2      (VALU)
    inv_p2 = pl.reciprocal(p2, approx=False)         # 1 / params[i]^2  (EUP)
    term = 0.5 * l_ref[...] * inv_p2 + jnp.log1p(p2)  # per-task weighted term
    out_ref[0, 0] = jnp.sum(term)                    # scalar reduce -> SMEM


def automatic_weighted_loss(params, losses):
    """params: (num,) f32, losses: (num,) f32 -> (1, 1) f32 array.

    Returns the loss sum as a (1, 1) array; callers needing a true scalar can
    reshape(()) outside (metadata-only).
    """
    num = params.shape[0]
    assert losses.shape == (num,)

    # Metadata-only reshapes to lane-major 2-D layout; casts (if any) stay in
    # the wrapper, never inside the kernel.
    p2d = params.astype(jnp.float32).reshape(1, num)
    l2d = losses.astype(jnp.float32).reshape(1, num)

    cost = pl.CostEstimate(
        flops=6 * num,
        transcendentals=2 * num,          # reciprocal + log1p per task
        bytes_accessed=2 * 4 * num + 4,   # two tiny inputs + scalar output
    )

    out = pl.pallas_call(
        _awl_kernel,
        out_shape=jax.ShapeDtypeStruct((1, 1), jnp.float32),
        in_specs=[
            pl.BlockSpec(memory_space=pltpu.MemorySpace.VMEM),
            pl.BlockSpec(memory_space=pltpu.MemorySpace.VMEM),
        ],
        out_specs=pl.BlockSpec(memory_space=pltpu.MemorySpace.SMEM),
        cost_estimate=cost,
    )(p2d, l2d)
    return out


def reference_awl(params, losses):
    p2 = params.astype(jnp.float32) ** 2
    return jnp.sum(0.5 / p2 * losses.astype(jnp.float32) + jnp.log(1.0 + p2))


if __name__ == "__main__":
    num = 2  # matches AutomaticWeightedLoss(num=2)

    # Deterministic parameter init, same as the module: torch.ones(num)
    params = jnp.ones((num,), dtype=jnp.float32)

    # Deterministic example multi-task losses (stand-ins for loss1, loss2, ...)
    key = jax.random.PRNGKey(0)
    losses = jax.random.uniform(key, (num,), dtype=jnp.float32, minval=0.5, maxval=3.0)

    out = automatic_weighted_loss(params, losses)
    out = jax.block_until_ready(out)

    ref = reference_awl(params, losses)
    assert jnp.allclose(out.reshape(()), ref, rtol=1e-5, atol=1e-5), (out, ref)

    print("KERNEL_OK")
</pallas_src>

<mosaic_0001>
module attributes {stable_mosaic.version = 11 : i64} {
  func.func @_awl_kernel(%arg0: memref<1x2xf32, #tpu.memory_space<vmem>>, %arg1: memref<1x2xf32, #tpu.memory_space<vmem>>, %arg2: memref<1x1xf32, #tpu.memory_space<smem>>) attributes {dimension_semantics = [], scalar_prefetch = 0 : i64, scratch_operands = 0 : i64, tpu.core_type = #tpu.core_type<tc>} {
    %c0 = arith.constant 0 : index
    %c0_0 = arith.constant 0 : index
    %0 = vector.load %arg0[%c0, %c0_0] : memref<1x2xf32, #tpu.memory_space<vmem>>, vector<1x2xf32>
    %1 = arith.mulf %0, %0 : vector<1x2xf32>
    %2 = tpu.reciprocal %1 : vector<1x2xf32> -> vector<1x2xf32>
    %c0_1 = arith.constant 0 : index
    %c0_2 = arith.constant 0 : index
    %3 = vector.load %arg1[%c0_1, %c0_2] : memref<1x2xf32, #tpu.memory_space<vmem>>, vector<1x2xf32>
    %cst = arith.constant 5.000000e-01 : f32
    %4 = vector.broadcast %cst : f32 to vector<1x2xf32>
    %5 = arith.mulf %4, %3 : vector<1x2xf32>
    %6 = arith.mulf %5, %2 : vector<1x2xf32>
    %7 = math.log1p %1 : vector<1x2xf32>
    %8 = arith.addf %6, %7 : vector<1x2xf32>
    %9 = vector.shape_cast %8 : vector<1x2xf32> to vector<1x1x2xf32>
    %cst_3 = arith.constant dense<0.000000e+00> : vector<1xf32>
    %10 = vector.multi_reduction <add>, %9, %cst_3 [1, 2] : vector<1x1x2xf32> to vector<1xf32>
    %11 = vector.shape_cast %10 : vector<1xf32> to vector<1x1x1xf32>
    %12 = vector.extract %11[0, 0, 0] : f32 from vector<1x1x1xf32>
    %c0_4 = arith.constant 0 : index
    %c0_5 = arith.constant 0 : index
    %13 = memref.load %arg2[%c0_4, %c0_5] : memref<1x1xf32, #tpu.memory_space<smem>>
    memref.store %12, %arg2[%c0_4, %c0_5] : memref<1x1xf32, #tpu.memory_space<smem>>
    return
  }
}

</mosaic_0001>

<bundles_post_ra>
// kernel: tpu_custom_call.1
= control target key start
LH: loop header
LB: loop body
LE: loop exit
PB: predicated region body
PF: predicated region fallthrough
CT: control target
= control target key end

     0   :  { %7 = vsyncpa [#allocation3], 0  ;;  %s201_s0 = inlined_call_operand.hbm [shape: f32[1,2], index: 0, kind: input, shape index: {}]   ;;  %s202_s1 = inlined_call_operand.hbm [shape: f32[1,2], index: 1, kind: input, shape index: {}]   ;;  %s203_s2 = inlined_call_operand.hbm [shape: f32[1,1], index: 2, kind: output, shape index: {}]  }
   0x1   :  { %8 = vsyncpa [#allocation6], 0 }
   0x2   :  { %9 = vsyncpa [#allocation4], 0  ;;  %s15_s11 = sshll.u32 %s201_s0, 4  ;;  %s174_s12 = smov [#allocation2]   ;;  %s16_s11 = int_to_ptr.hbm [resolvable:$true] %s15_s11 }
   0x3   :  { %s17_s13 = sshll.u32 %s174_s12, 4  ;;  %s26_s16 = sshll.u32 %s202_s1, 4  ;;  %s18_s13 = int_to_ptr.vmem [resolvable:$true] %s17_s13  ;;  %s27_s16 = int_to_ptr.hbm [resolvable:$true] %s26_s16 }
   0x4   :  { %20 = dma.hbm_to_vmem [thread:$0]  %s16_s11, 16, %s18_s13, [#allocation3]  }
   0x5   :  { %s175_s17 = smov [#allocation5]  }
   0x6   :  { %s28_s18 = sshll.u32 %s175_s17, 4  ;;  %s29_s18 = int_to_ptr.vmem [resolvable:$true] %s28_s18 }
   0x7   :  { %31 = dma.hbm_to_vmem [thread:$0]  %s27_s16, 16, %s29_s18, [#allocation6]  }
   0x8   :  { %168 = dma.done.wait [#allocation3], 16  }
   0x9   :  { %169 = vsyncadd [#allocation3], 4294967280 }
   0xa   :  { %170 = dma.done.wait [#allocation6], 16  }
   0xb   :  { %171 = vsyncadd [#allocation6], 4294967280  ;;  %v40_v0 = vld [vmem:[#allocation2] sm:$0x1]  ;;  %v56_v11 = vld [vmem:[#allocation5] sm:$0x1] }
   0xc   :  { %v41_v1 = vmul.f32 %v40_v0, %v40_v0  ;;  %v57_v17 = vmul.f32 0.5, %v56_v11  ;;  %vm69_vm5 = vcmask 8192   ;;  %s87_s19 = sshll.u32 %s203_s2, 4  ;;  %s176_s21 = smov [#allocation7]   ;;  %s88_s19 = int_to_ptr.hbm [resolvable:$true] %s87_s19 }
   0xe   :  { %104 = vrcp.f32 %v41_v1  ;;  %v59_v2 = vadd.f32 1.0, %v41_v1  ;;  %v62_v3 = vmul.f32 -0.5, %v41_v1  ;;  %v53_v6 = vand.u32 2147483648, %v41_v1 }
   0xf   :  { %vm47_vm0 = vweird.f32 %v41_v1  ;;  %v51_v10 = vand.u32 2147483647, %v41_v1 }
  0x10   :  { %106 = vlog2.f32 %v59_v2  ;;  %v63_v7 = vadd.f32 1.0, %v62_v3  ;;  %v54_v13 = vor.u32 1.1754944e-38, %v53_v6 }
  0x11   :  { %vm52_vm3 = vcmp.eq.f32.partialorder %v51_v10, 8.507059e+37  ;;  %vm66_vm4 = vcmp.lt.f32.partialorder %v51_v10, 0.0004427343 }
  0x12   :  { %v64_v15 = vmul.f32 %v63_v7, %v41_v1 }
  0x14   :  { %v105_v4 = vpop.eup %104 }
  0x15   :  { %v43_v5 = vmul.f32 %v105_v4, %v41_v1  ;;  %vm48_vm1 = vweird.f32 %v105_v4 }
  0x16   :  { %v107_v8 = vpop.eup %106  ;;  %vm49_vm2 = vmor %vm47_vm0, %vm48_vm1 }
  0x17   :  { %v44_v9 = vsub.f32 1.0, %v43_v5  ;;  %v61_v14 = vmul.f32 0.6931472, %v107_v8 }
  0x19   :  { %v45_v12 = vmul.f32 %v105_v4, %v44_v9  ;;  %v67_v20 = vsel %vm66_vm4, %v64_v15, %v61_v14 }
  0x1b   :  { %v46_v16 = vadd.f32 %v105_v4, %v45_v12 }
  0x1d   :  { %v50_v18 = vsel %vm49_vm2, %v105_v4, %v46_v16 }
  0x1e   :  { %v55_v19 = vsel %vm52_vm3, %v54_v13, %v50_v18 }
  0x1f   :  { %v58_v21 = vmul.f32 %v57_v17, %v55_v19 }
  0x21   :  { %v68_v22 = vadd.f32 %v67_v20, %v58_v21 }
  0x23   :  { %v70_v23 = vsel %vm69_vm5, %v68_v22, 0.0 }
  0x24   :  { %71 = vadd.xlane.f32.xlu0 %v70_v23 }
  0x97   :  { %v72_v24 = vpop.xlane.xlu0 %71 }
  0x98   :  { %v73_v25 = vrot.slane %v72_v24, 4 }
  0x9a   :  { %v74_v26 = vadd.f32 %v73_v25, %v72_v24 }
  0x9c   :  { %v75_v27 = vrot.slane %v74_v26, 2 }
  0x9e   :  { %v76_v28 = vadd.f32 %v75_v27, %v74_v26 }
  0xa0   :  { %v77_v29 = vrot.slane %v76_v28, 1 }
  0xa2   :  { %v78_v30 = vadd.f32 %v77_v29, %v76_v28 }
  0xa4   :  { %99 = vpush %v78_v30 }
  0xd5   :  { %s100_s20 = spop %99 }
  0xd6   :  { %81 = sst [smem:[#allocation7]] %s100_s20 }
  0xd7   :  { %90 = dma.smem_to_hbm %s176_s21, 16, %s88_s19, [#allocation4]  }
  0xd8   :  { %172 = dma.done.wait [#allocation4], 16  }
  0xd9   :  { %173 = vsyncadd [#allocation4], 4294967280 }
  0xda   :  { %95 = sfence }
  0xdb   :  { %96 = vsyncpa [#allocation3], 1 }
  0xdc   :  { %97 = vsyncpa [#allocation6], 1 }
  0xdd   :  { %98 = vsyncpa [#allocation4], 1 }

</bundles_post_ra>
